<compile_context>
chip_gen: v7x
topology: tpu7x:2x2x1
jax: 0.10.0
libtpu: 0.0.40
codegen_flags: <defaults>
</compile_context>

<pallas_src>
import functools

import jax
import jax.numpy as jnp
from jax.experimental import pallas as pl
from jax.experimental.pallas import tpu as pltpu


def _conv1d_derivative_kernel(w_ref, x_ref, o_ref):
    # w_ref: (K,) f32 in SMEM  -- stencil taps, pre-divided by resol
    # x_ref: (bt, L_pad) in VMEM, native input dtype
    # o_ref: (bt, L_pad) in VMEM -- lane-dense; columns >= L_out hold wrap-around
    #        junk that the wrapper slices off.
    K = w_ref.shape[0]
    L_pad = x_ref.shape[1]

    x = x_ref[...]  # keep native dtype; cast per tap below

    # out[:, i] = sum_k w[k] * x[:, i + k]   (valid cross-correlation)
    # roll(x, L_pad - k) == shift-left-by-k with wraparound; for i < L_out the
    # rolled reads never touch wrapped columns.
    acc = w_ref[0] * x.astype(jnp.float32)
    for k in range(1, K):
        shifted = pltpu.roll(x, shift=L_pad - k, axis=1)  # Mosaic roll: positive axis
        acc = acc + w_ref[k] * shifted.astype(jnp.float32)

    o_ref[...] = acc.astype(o_ref.dtype)


def _round_up(x, m):
    return ((x + m - 1) // m) * m


def _sublane_pack(dtype):
    # Native second-minor tiling: 8 rows for 4-byte, 16 for 2-byte, 32 for 1-byte.
    return max(8, 32 // jnp.dtype(dtype).itemsize)


def conv1d_derivative(x, der_filter, resol, *,
                      max_batch_tile=256,
                      vmem_budget_bytes=None,
                      out_dtype=jnp.float32,
                      return_padded=False,
                      small_input_fallback=False):
    """Pallas equivalent of Conv1dDerivative.forward.

    x:          (B, 1, L)  (PyTorch NCL layout, any float dtype)
    der_filter: (1, 1, K)  fixed, non-trainable stencil
    resol:      scalar divisor
    returns:    (B, 1, L - K + 1) in `out_dtype` (default f32), or, when
                `return_padded=True`, the raw (B_pad, L_pad) slab plus L_out so
                the consumer can slice/fuse lazily and avoid an extra HBM pass.
    """
    B, C, L = x.shape
    assert C == 1, "Conv1dDerivative uses a single in/out channel"

    # Fold 1/resol into the taps once on the host side.
    w = (jnp.asarray(der_filter, jnp.float32).reshape(-1)
         / jnp.asarray(resol, jnp.float32))
    K = int(w.shape[0])
    assert L >= K, "input length must be >= kernel size"
    L_out = L - K + 1

    if small_input_fallback and B * L < 100_000:
        # Tiny problems: fused XLA beats kernel launch + padding overhead.
        return _reference(x, der_filter, resol).astype(out_dtype)

    x2d = x.reshape(B, L)  # native dtype; kernel casts per tap
    in_itemsize = jnp.dtype(x2d.dtype).itemsize
    out_itemsize = jnp.dtype(out_dtype).itemsize
    pack = _sublane_pack(x2d.dtype)

    # Lane-dense padding of the length axis.
    L_pad = _round_up(L, 128)

    # Chip-aware VMEM budget: v7x has only 64 MiB/TC, v5e/v6e have 128 MiB.
    if vmem_budget_bytes is None:
        try:
            cap = pltpu.get_tpu_info().vmem_capacity_bytes
        except Exception:
            cap = 64 * 1024 * 1024  # conservative (v7x)
        vmem_budget_bytes = (48 << 20) if cap >= (128 << 20) else (16 << 20)

    # Per-row VMEM footprint: double-buffered input + output tiles, PLUS
    # in-kernel temporaries (K-1 rolled native copies, their f32 casts, acc)
    # ~ (K + 2) f32 rows.  This keeps the pipeline double-buffered instead of
    # degrading to spill-bound / failing the VMEM limit.
    bytes_per_row = (2 * L_pad * (in_itemsize + out_itemsize)
                     + (K + 2) * L_pad * 4)

    bt_cap = max(pack, (vmem_budget_bytes // bytes_per_row) // pack * pack)
    bt = min(max_batch_tile, bt_cap, _round_up(B, pack))
    bt = max(pack, bt)
    B_pad = _round_up(B, bt)

    # Make sure the single "parallel" grid axis has >= 2 tiles (v7x: 2 TCs per
    # chip) whenever the batch allows it.
    while B_pad // bt < 2 and bt > pack:
        bt = max(pack, ((bt // 2 + pack - 1) // pack) * pack)
        B_pad = _round_up(B, bt)

    # TODO(synk): for extremely long L where even a single `pack`-row tile
    # exceeds the budget, split L into a second grid axis with a (K-1) halo.

    if (B_pad, L_pad) != (B, L):
        x2d = jnp.pad(x2d, ((0, B_pad - B), (0, L_pad - L)))

    grid_b = B_pad // bt

    tile_bytes = bt * bytes_per_row
    vmem_limit = max(32 << 20, min(tile_bytes + (8 << 20), 100 << 20))

    out2d = pl.pallas_call(
        _conv1d_derivative_kernel,
        out_shape=jax.ShapeDtypeStruct((B_pad, L_pad), out_dtype),
        grid=(grid_b,),
        in_specs=[
            pl.BlockSpec(memory_space=pltpu.MemorySpace.SMEM),   # taps (whole array)
            pl.BlockSpec((bt, L_pad), lambda i: (i, 0)),          # input batch tile
        ],
        out_specs=pl.BlockSpec((bt, L_pad), lambda i: (i, 0)),    # lane-dense out
        compiler_params=pltpu.CompilerParams(
            dimension_semantics=("parallel",),   # shard batch tiles across TCs
            vmem_limit_bytes=int(vmem_limit),    # covers v5e's 16 MiB scoped default
        ),
        cost_estimate=pl.CostEstimate(
            flops=2 * K * B_pad * L_pad,
            transcendentals=0,
            bytes_accessed=B_pad * L_pad * (in_itemsize + out_itemsize),
        ),
    )(w, x2d)

    if return_padded:
        return out2d, L_out
    return out2d[:B, :L_out].reshape(B, 1, L_out)


def _reference(x, der_filter, resol):
    # Plain-JAX reference: valid cross-correlation, matches nn.Conv1d(pad=0) / resol.
    w = jnp.asarray(der_filter, jnp.float32).reshape(-1)
    K = w.shape[0]
    B, C, L = x.shape
    L_out = L - K + 1
    x2 = x.reshape(B, L).astype(jnp.float32)
    acc = jnp.zeros((B, L_out), jnp.float32)
    for k in range(K):
        acc = acc + w[k] * x2[:, k:k + L_out]
    return (acc / jnp.asarray(resol, jnp.float32)).reshape(B, 1, L_out)


if __name__ == "__main__":
    key = jax.random.PRNGKey(0)
    B, L = 2, 16
    x = jax.random.normal(key, (B, 1, L), dtype=jnp.float32)

    # As used in PhyCRNet_burgers.py: central-difference time-derivative stencil.
    dt = 0.002
    der_filter = jnp.array([[[-1.0, 0.0, 1.0]]], dtype=jnp.float32)
    resol = dt * 2.0

    out = conv1d_derivative(x, der_filter, resol)
    out = jax.block_until_ready(out)

    ref = _reference(x, der_filter, resol)
    assert out.shape == (B, 1, L - 3 + 1), out.shape
    assert jnp.allclose(out, ref, atol=1e-5, rtol=1e-5)

    print("KERNEL_OK")
</pallas_src>

<mosaic_0001>
module attributes {stable_mosaic.version = 11 : i64} {
  func.func @_conv1d_derivative_kernel(%arg0: i32, %arg1: memref<3xf32, #tpu.memory_space<smem>>, %arg2: memref<8x128xf32, #tpu.memory_space<vmem>>, %arg3: memref<8x128xf32, #tpu.memory_space<vmem>>) attributes {dimension_semantics = [#tpu.dimension_semantics<parallel>], iteration_bounds = array<i64: 1>, scalar_prefetch = 0 : i64, scratch_operands = 0 : i64, tpu.core_type = #tpu.core_type<tc>, window_params = [{transform_indices = @transform_0, window_bounds = array<i64: 3>}, {transform_indices = @transform_1, window_bounds = array<i64: 8, 128>}, {transform_indices = @transform_2, window_bounds = array<i64: 8, 128>}]} {
    %c0 = arith.constant 0 : index
    %c0_0 = arith.constant 0 : index
    %0 = vector.load %arg2[%c0, %c0_0] : memref<8x128xf32, #tpu.memory_space<vmem>>, vector<8x128xf32>
    %c0_1 = arith.constant 0 : index
    %1 = memref.load %arg1[%c0_1] : memref<3xf32, #tpu.memory_space<smem>>
    %2 = vector.broadcast %1 : f32 to vector<8x128xf32>
    %3 = arith.mulf %2, %0 : vector<8x128xf32>
    %c127_i32 = arith.constant 127 : i32
    %4 = tpu.dynamic_rotate %0 by %c127_i32 dim 1 : vector<8x128xf32>, i32 -> vector<8x128xf32>
    %c1 = arith.constant 1 : index
    %5 = memref.load %arg1[%c1] : memref<3xf32, #tpu.memory_space<smem>>
    %6 = vector.broadcast %5 : f32 to vector<8x128xf32>
    %7 = arith.mulf %6, %4 : vector<8x128xf32>
    %8 = arith.addf %3, %7 : vector<8x128xf32>
    %c126_i32 = arith.constant 126 : i32
    %9 = tpu.dynamic_rotate %0 by %c126_i32 dim 1 : vector<8x128xf32>, i32 -> vector<8x128xf32>
    %c2 = arith.constant 2 : index
    %10 = memref.load %arg1[%c2] : memref<3xf32, #tpu.memory_space<smem>>
    %11 = vector.broadcast %10 : f32 to vector<8x128xf32>
    %12 = arith.mulf %11, %9 : vector<8x128xf32>
    %13 = arith.addf %8, %12 : vector<8x128xf32>
    %c0_2 = arith.constant 0 : index
    %c0_3 = arith.constant 0 : index
    %14 = vector.load %arg3[%c0_2, %c0_3] : memref<8x128xf32, #tpu.memory_space<vmem>>, vector<8x128xf32>
    tpu.vector_store %arg3[%c0_2, %c0_3], %13 {strides = array<i32>} : memref<8x128xf32, #tpu.memory_space<vmem>>, vector<8x128xf32>,
    return
  }
  func.func @transform_0(%arg0: i32) -> i32 {
    %c0_i32 = arith.constant 0 : i32
    %c0_i32_0 = arith.constant 0 : i32
    return %c0_i32 : i32
  }
  func.func @transform_1(%arg0: i32) -> (i32, i32) {
    %c0_i32 = arith.constant 0 : i32
    %c0_i32_0 = arith.constant 0 : i32
    return %arg0, %c0_i32 : i32, i32
  }
  func.func @transform_2(%arg0: i32) -> (i32, i32) {
    %c0_i32 = arith.constant 0 : i32
    %c0_i32_0 = arith.constant 0 : i32
    return %arg0, %c0_i32 : i32, i32
  }
}

</mosaic_0001>

<bundles_post_ra>
// kernel: tpu_custom_call.1
= control target key start
LH: loop header
LB: loop body
LE: loop exit
PB: predicated region body
PF: predicated region fallthrough
CT: control target
= control target key end

     0   :  { %7 = vsyncpa [#allocation5], 0  ;;  %s191_s0 = inlined_call_operand.hbm [shape: f32[3], index: 0, kind: input, shape index: {}]   ;;  %s192_s1 = inlined_call_operand.hbm [shape: f32[8,128], index: 1, kind: input, shape index: {}]   ;;  %s193_s2 = inlined_call_operand.hbm [shape: f32[8,128], index: 2, kind: output, shape index: {}]  }
   0x1   :  { %8 = vsyncpa [#allocation3], 0 }
   0x2   :  { %9 = vsyncpa [#allocation4], 0  ;;  %s75_s11 = scalar_lea.hbm %s191_s0, 16 }
   0x3   :  { %p76_p0 = scmp.ne.s32.totalorder %s191_s0, %s75_s11  ;;  %p79_p1 = scmp.lt.u32.totalorder %s75_s11, %s191_s0 }
   0x5   :  { %p81_p2 = pnand %p79_p1, %p76_p0 }
   0x7   :  { %84 = shalt.err (!%p81_p2)
}
   0x8   :  { %s135_s16 = smov [#allocation2]   ;;  %s136_s19 = smov [#allocation6]  }
   0x9   :  { %17 = dma.hbm_to_smem %s191_s0, 16, %s135_s16, [#allocation5]  }
   0xa   :  { %s24_s20 = sshll.u32 %s136_s19, 4  ;;  %s85_s23 = scalar_lea.hbm %s192_s1, 128  ;;  %s25_s20 = int_to_ptr.vmem [resolvable:$true] %s24_s20 }
   0xb   :  { %p86_p3 = scmp.ne.s32.totalorder %s192_s1, %s85_s23  ;;  %p89_p4 = scmp.lt.u32.totalorder %s85_s23, %s192_s1 }
   0xd   :  { %p91_p5 = pnand %p89_p4, %p86_p3 }
   0xf   :  { %94 = shalt.err (!%p91_p5)
}
  0x10   :  { %s95_s28 = scalar_lea.vmem %s25_s20, 128  ;;  %p100_p7 = scmp.lt.s32.totalorder %s25_s20, %s25_s20 }
  0x11   :  { %p96_p6 = scmp.ne.s32.totalorder %s25_s20, %s95_s28  ;;  %p101_p8 = scmp.lt.s32.totalorder %s95_s28, %s95_s28 }
  0x13   :  { %p102_p9 = por %p101_p8, %p100_p7 }
  0x15   :  { %p103_p10 = pnand %p102_p9, %p96_p6 }
  0x17   :  { %106 = shalt.err (!%p103_p10)
}
  0x18   :  { %27 = dma.hbm_to_vmem [thread:$0]  %s192_s1, 128, %s25_s20, [#allocation3]  }
  0x19   :  { %129 = dma.done.wait [#allocation5], 16  }
  0x1a   :  { %130 = vsyncadd [#allocation5], 4294967280 }
  0x1b   :  { %131 = dma.done.wait [#allocation3], 128  }
  0x1c   :  { %132 = vsyncadd [#allocation3], 4294967168 }
  0x1d   :  { %34 = sfence }
  0x1e   :  { %v35_v0 = vld [vmem:[#allocation6] sm:$0xff]  ;;  %s137_s30 = smov 127   ;;  %s138_s3 = smov 126  }
  0x1f   :  { %39 = vrot.lane.b32.xlu0 %v35_v0, %s137_s30  ;;  %s36_s4 = sld [smem:[#allocation2]]  ;;  %s68_s5 = sld [smem:[#allocation2 + $0x1]] }
  0x20   :  { %s69_s6 = sld [smem:[#allocation2 + $0x2]]  ;;  %s139_s1 = smov [#allocation7]  }
  0x21   :  { %s58_s7 = sshll.u32 %s139_s1, 4  ;;  %s59_s7 = int_to_ptr.vmem [resolvable:$true] %s58_s7 }
  0x22   :  { %s107_s8 = scalar_lea.vmem %s59_s7, 128  ;;  %p112_p12 = scmp.lt.s32.totalorder %s59_s7, %s59_s7 }
  0x23   :  { %45 = vrot.lane.b32.xlu0 %v35_v0, %s138_s3  ;;  %p108_p11 = scmp.ne.s32.totalorder %s59_s7, %s107_s8  ;;  %p113_p13 = scmp.lt.s32.totalorder %s107_s8, %s107_s8 }
  0x25   :  { %v37_v1 = vstv %s36_s4  ;;  %v42_v2 = vstv %s68_s5  ;;  %p114_p0 = por %p113_p13, %p112_p12 }
  0x26   :  { %v38_v4 = vmul.f32 %v37_v1, %v35_v0  ;;  %v48_v6 = vstv %s69_s6 }
  0x27   :  { %p115_p1 = pnand %p114_p0, %p108_p11 }
  0x91   :  { %v40_v3 = vpop.permute.xlu0 %39 }
  0x92   :  { %v43_v5 = vmul.f32 %v42_v2, %v40_v3 }
  0x94   :  { %v44_v8 = vadd.f32 %v43_v5, %v38_v4 }
  0x95   :  { %v46_v7 = vpop.permute.xlu0 %45 }
  0x96   :  { %v49_v9 = vmul.f32 %v48_v6, %v46_v7 }
  0x98   :  { %v50_v10 = vadd.f32 %v49_v9, %v44_v8 }
  0x9a   :  { %51 = vst [vmem:[#allocation7] sm:$0xff] %v50_v10 }
  0x9b   :  { %118 = shalt.err (!%p115_p1)
}
  0x9c   :  { %s119_s11 = scalar_lea.hbm %s193_s2, 128 }
  0x9d   :  { %p120_p2 = scmp.ne.s32.totalorder %s193_s2, %s119_s11  ;;  %p123_p3 = scmp.lt.u32.totalorder %s119_s11, %s193_s2 }
  0x9f   :  { %p125_p4 = pnand %p123_p3, %p120_p2 }
  0xa1   :  { %128 = shalt.err (!%p125_p4)
}
  0xa2   :  { %61 = dma.vmem_to_hbm [thread:$0]  %s59_s7, 128, %s193_s2, [#allocation4]  }
  0xa3   :  { %133 = dma.done.wait [#allocation4], 128  }
  0xa4   :  { %134 = vsyncadd [#allocation4], 4294967168 }
  0xa5   :  { %65 = vsyncpa [#allocation3], 1 }
  0xa6   :  { %66 = vsyncpa [#allocation4], 1 }
  0xa7   :  { %67 = vsyncpa [#allocation5], 1 }

</bundles_post_ra>
